<compile_context>
chip_gen: v6e
topology: v6e:2x2x1
jax: 0.10.0
libtpu: 0.0.40
codegen_flags: <defaults>
</compile_context>

<pallas_src>
import functools
import math

import jax
import jax.numpy as jnp
from jax.experimental import pallas as pl
from jax.experimental.pallas import tpu as pltpu

_LANE = 128
# 2048 rows x 128 lanes x 4 B = 1 MiB per f32 buffer; with double-buffered
# input + output that is ~4 MiB of VMEM — comfortable on every chip's scoped
# VMEM default (16/32/32 MiB).
_MAX_TILE_ROWS = 2048


def _leaky_relu_kernel(x_ref, o_ref, *, negative_slope):
    x = x_ref[...]
    if negative_slope == 0.0:
        # Plain ReLU: single VPU max against zero.
        o_ref[...] = jnp.maximum(x, jnp.zeros_like(x))
    else:
        slope = jnp.asarray(negative_slope, dtype=x.dtype)
        o_ref[...] = jnp.where(x >= 0, x, x * slope)


@functools.partial(jax.jit, static_argnames=("negative_slope",))
def relu_pallas(x, *, negative_slope=0.0):
    """Elementwise ReLU (negative_slope == 0) / LeakyReLU (negative_slope > 0)."""
    orig_shape = x.shape
    total = math.prod(orig_shape)

    # Lane-dense 2D view: (rows, 128). Only pad when total isn't a multiple
    # of the lane width (at most 127 extra elements).
    rows = pl.cdiv(total, _LANE)
    pad_total = rows * _LANE
    x_flat = x.reshape(-1)
    if pad_total != total:
        x_flat = jnp.pad(x_flat, (0, pad_total - total))
    x2 = x_flat.reshape(rows, _LANE)

    if rows <= _MAX_TILE_ROWS:
        # Single grid step, block == full array (always a legal block shape).
        tile_rows = rows
        grid = (1,)
    else:
        # Multi-step: fixed 2048x128 blocks; Pallas masks the ragged last
        # block, so no padding up to a tile boundary is needed.
        tile_rows = _MAX_TILE_ROWS
        grid = (pl.cdiv(rows, tile_rows),)

    out2 = pl.pallas_call(
        functools.partial(_leaky_relu_kernel,
                          negative_slope=float(negative_slope)),
        out_shape=jax.ShapeDtypeStruct((rows, _LANE), x.dtype),
        grid=grid,
        in_specs=[pl.BlockSpec((tile_rows, _LANE), lambda i: (i, 0))],
        out_specs=pl.BlockSpec((tile_rows, _LANE), lambda i: (i, 0)),
        compiler_params=pltpu.CompilerParams(
            dimension_semantics=("parallel",)),
    )(x2)

    if pad_total != total:
        out = out2.reshape(-1)[:total].reshape(orig_shape)
    else:
        out = out2.reshape(orig_shape)
    return out


class ReLU:
    """Mirror of the PyTorch module: relu > 0 -> LeakyReLU(relu), relu == 0 -> ReLU."""

    def __init__(self, relu):
        if relu < 0:
            raise ValueError("relu must be >= 0")
        self.negative_slope = float(relu)

    def __call__(self, x):
        return relu_pallas(x, negative_slope=self.negative_slope)


if __name__ == "__main__":
    key = jax.random.PRNGKey(0)
    # Small shape consistent with the module's usage: batch=2, ch=4, spatial=16.
    x = jax.random.normal(key, (2, 4, 16, 16), dtype=jnp.float32)

    # relu == 0  ->  plain ReLU
    relu_mod = ReLU(0)
    out = relu_mod(x)
    jax.block_until_ready(out)
    ref = jnp.maximum(x, 0.0)
    assert out.shape == x.shape, out.shape
    assert jnp.allclose(out, ref, atol=1e-7, rtol=1e-7)

    # relu > 0  ->  LeakyReLU(negative_slope=relu)
    leaky_mod = ReLU(0.2)
    out_l = leaky_mod(x)
    jax.block_until_ready(out_l)
    ref_l = jnp.where(x >= 0, x, 0.2 * x)
    assert jnp.allclose(out_l, ref_l, atol=1e-6, rtol=1e-6)

    print("KERNEL_OK")
</pallas_src>

<mosaic_0001>
module attributes {stable_mosaic.version = 11 : i64} {
  func.func @_leaky_relu_kernel(%arg0: i32, %arg1: memref<16x128xf32, #tpu.memory_space<vmem>>, %arg2: memref<16x128xf32, #tpu.memory_space<vmem>>) attributes {dimension_semantics = [#tpu.dimension_semantics<parallel>], iteration_bounds = array<i64: 1>, scalar_prefetch = 0 : i64, scratch_operands = 0 : i64, tpu.core_type = #tpu.core_type<tc>, window_params = [{transform_indices = @transform_0, window_bounds = array<i64: 16, 128>}, {transform_indices = @transform_1, window_bounds = array<i64: 16, 128>}]} {
    %c0 = arith.constant 0 : index
    %c0_0 = arith.constant 0 : index
    %0 = vector.load %arg1[%c0, %c0_0] : memref<16x128xf32, #tpu.memory_space<vmem>>, vector<16x128xf32>
    %cst = arith.constant 0.000000e+00 : f32
    %1 = vector.broadcast %cst : f32 to vector<16x128xf32>
    %2 = arith.maximumf %0, %1 : vector<16x128xf32>
    %c0_1 = arith.constant 0 : index
    %c0_2 = arith.constant 0 : index
    %3 = vector.load %arg2[%c0_1, %c0_2] : memref<16x128xf32, #tpu.memory_space<vmem>>, vector<16x128xf32>
    tpu.vector_store %arg2[%c0_1, %c0_2], %2 {strides = array<i32>} : memref<16x128xf32, #tpu.memory_space<vmem>>, vector<16x128xf32>,
    return
  }
  func.func @transform_0(%arg0: i32) -> (i32, i32) {
    %c0_i32 = arith.constant 0 : i32
    %c0_i32_0 = arith.constant 0 : i32
    return %arg0, %c0_i32 : i32, i32
  }
  func.func @transform_1(%arg0: i32) -> (i32, i32) {
    %c0_i32 = arith.constant 0 : i32
    %c0_i32_0 = arith.constant 0 : i32
    return %arg0, %c0_i32 : i32, i32
  }
}

</mosaic_0001>

<bundles_post_ra>
// kernel: relu_pallas.1
= control target key start
LH: loop header
LB: loop body
LE: loop exit
PB: predicated region body
PF: predicated region fallthrough
CT: control target
= control target key end

     0   :  { %s40_s0 = inlined_call_operand.vmem [shape: f32[16,128], index: 0, kind: input, shape index: {}]   ;;  %s41_s1 = inlined_call_operand.vmem [shape: f32[16,128], index: 1, kind: output, shape index: {}]  }
   0x1   :  { %v8_v0 = vld [vmem:[%s40_s0] sm:$0xff]  ;;  %v9_v1 = vld [vmem:[%s40_s0 + $0x8] sm:$0xff] }
   0x2   :  { %v10_v2 = vmax.f32 %v8_v0, 0.0  ;;  %v11_v3 = vmax.f32 %v9_v1, 0.0 }
   0x4   :  { %12 = vst [vmem:[%s41_s1] sm:$0xff] %v10_v2  ;;  %13 = vst [vmem:[%s41_s1 + $0x8] sm:$0xff] %v11_v3 }

</bundles_post_ra>
